<compile_context>
chip_gen: v6e
topology: v6e:2x2x1
jax: 0.10.0
libtpu: 0.0.40
codegen_flags: <defaults>
</compile_context>

<pallas_src>
import functools

import jax
import jax.numpy as jnp
from jax import lax
from jax.experimental import pallas as pl
from jax.experimental.pallas import tpu as pltpu

LANE = 128
SUBLANE = 8
CHUNK_ROWS = 64            # 64x128 f32 = 8 vregs per operand -> chain stays in vregs
DEFAULT_BLOCK_ROWS = 8192  # 4 MiB per f32 input tile; 3 inputs x 2 buffers = 24 MiB


def _num_tensorcores():
    """Grid-split factor for the leading 'parallel' axis.

    2 on chips that expose two TensorCores to one Pallas kernel (v7x, megacore
    v4/v5p); 1 on single-core chips (v5e/v6e) where the extra axis only adds a
    clamp and a wasted re-read step.
    """
    try:
        kind = jax.devices()[0].device_kind.lower()
    except Exception:
        return 1
    if any(s in kind for s in ("v2", "v3", "v5 lite", "v5e", "v6 lite", "v6e")):
        return 1
    return 2


def _wbce_kernel(z_ref, t_ref, w_ref, loss_acc_ref, w_acc_ref, *,
                 block_rows, blocks_per_core, num_blocks, tail_rows, ncores):
    c = pl.program_id(0)   # "parallel" core-split axis
    i = pl.program_id(1)   # "arbitrary" reduction axis

    @pl.when(i == 0)
    def _init():
        loss_acc_ref[...] = jnp.zeros_like(loss_acc_ref)
        w_acc_ref[...] = jnp.zeros_like(w_acc_ref)

    block_idx = c * blocks_per_core + i

    def chunk(r0, nrows, acc):
        # nrows is a static Python int (multiple of 8); r0 may be traced.
        z = z_ref[pl.ds(r0, nrows), :].astype(jnp.float32)
        t = t_ref[pl.ds(r0, nrows), :].astype(jnp.float32)
        w = w_ref[pl.ds(r0, nrows), :].astype(jnp.float32)
        # Numerically stable BCE-with-logits, single (factored) weight multiply.
        core = jnp.maximum(z, 0.0) - z * t + jnp.log1p(jnp.exp(-jnp.abs(z)))
        loss = w * core
        la, wa = acc
        la = la + jnp.sum(loss.reshape(-1, SUBLANE, LANE), axis=0)
        wa = wa + jnp.sum(w.reshape(-1, SUBLANE, LANE), axis=0)
        return la, wa

    def accumulate_rows(nrows):
        # Fold `nrows` valid rows of this block (a static count, multiple of 8)
        # into the resident (8,128) accumulators, CHUNK_ROWS rows at a time.
        n_chunks = nrows // CHUNK_ROWS
        rem = nrows % CHUNK_ROWS
        acc = (jnp.zeros((SUBLANE, LANE), jnp.float32),
               jnp.zeros((SUBLANE, LANE), jnp.float32))
        if n_chunks > 0:
            def body(s, a):
                r0 = pl.multiple_of(s * CHUNK_ROWS, CHUNK_ROWS)
                return chunk(r0, CHUNK_ROWS, a)
            acc = lax.fori_loop(0, n_chunks, body, acc,
                                unroll=min(4, n_chunks))
        if rem > 0:
            acc = chunk(n_chunks * CHUNK_ROWS, rem, acc)
        la, wa = acc
        loss_acc_ref[...] += la
        w_acc_ref[...] += wa

    needs_tail = tail_rows != block_rows                   # static
    has_surplus = ncores * blocks_per_core > num_blocks    # static

    if needs_tail:
        @pl.when(block_idx < num_blocks - 1)
        def _full():
            accumulate_rows(block_rows)

        @pl.when(block_idx == num_blocks - 1)
        def _tail():
            accumulate_rows(tail_rows)
    elif has_surplus:
        @pl.when(block_idx < num_blocks)
        def _full():
            accumulate_rows(block_rows)
    else:
        accumulate_rows(block_rows)


@functools.partial(jax.jit, static_argnames=("block_rows",))
def weighted_bce_loss_2d(logits, labels, weights, block_rows=DEFAULT_BLOCK_ROWS):
    n = logits.size
    ncores = _num_tensorcores()
    block_rows = (-(-block_rows // SUBLANE)) * SUBLANE     # keep (8,128) tiling legal

    # Lane-dense (rows, 128) slab.  Zero-pad only up to the next multiple of
    # 8*128 = 1024 elements; padded zeros contribute exactly 0 to both sums, so
    # no masking is needed in the kernel.  Inputs keep their caller dtype.
    chunk_elems = SUBLANE * LANE
    rows = (-(-n // chunk_elems)) * SUBLANE                # multiple of 8
    total = rows * LANE

    def prep(x):
        x = jnp.ravel(x)
        if total != n:
            x = jnp.pad(x, (0, total - n))
        return x.reshape(rows, LANE)

    z2d, t2d, w2d = prep(logits), prep(labels), prep(weights)

    bm = block_rows if rows >= block_rows else rows
    num_blocks = -(-rows // bm)
    bpc = -(-num_blocks // ncores)                         # reduction steps per core
    tail_rows = rows - (num_blocks - 1) * bm               # rows in the last block

    kernel = functools.partial(
        _wbce_kernel, block_rows=bm, blocks_per_core=bpc,
        num_blocks=num_blocks, tail_rows=tail_rows, ncores=ncores)

    def in_map(c, i):
        # Clamp so a core's surplus iterations re-read the last block (DMA
        # legality); their contribution is skipped by a scalar guard in-kernel.
        return (jnp.minimum(c * bpc + i, num_blocks - 1), 0)

    bytes_per_elem = (logits.dtype.itemsize + labels.dtype.itemsize
                      + weights.dtype.itemsize)

    loss_parts, w_parts = pl.pallas_call(
        kernel,
        out_shape=(
            jax.ShapeDtypeStruct((ncores * SUBLANE, LANE), jnp.float32),
            jax.ShapeDtypeStruct((ncores * SUBLANE, LANE), jnp.float32),
        ),
        grid=(ncores, bpc),
        in_specs=[
            pl.BlockSpec((bm, LANE), in_map),
            pl.BlockSpec((bm, LANE), in_map),
            pl.BlockSpec((bm, LANE), in_map),
        ],
        out_specs=(
            pl.BlockSpec((SUBLANE, LANE), lambda c, i: (c, 0)),
            pl.BlockSpec((SUBLANE, LANE), lambda c, i: (c, 0)),
        ),
        compiler_params=pltpu.CompilerParams(
            dimension_semantics=("parallel", "arbitrary"),
            vmem_limit_bytes=48 * 1024 * 1024,
        ),
        cost_estimate=pl.CostEstimate(
            flops=8 * n,
            transcendentals=2 * n,
            bytes_accessed=n * bytes_per_elem + 2 * ncores * SUBLANE * LANE * 4,
        ),
    )(z2d, t2d, w2d)

    # Single cross-lane reduce + divide (matches PyTorch: NaN if sum(w) == 0).
    return jnp.sum(loss_parts) / jnp.sum(w_parts)


def _reference(logits, labels, weights):
    w = jnp.ravel(weights).astype(jnp.float32)
    z = jnp.ravel(logits).astype(jnp.float32)
    t = jnp.ravel(labels).astype(jnp.float32)
    loss = w * (jnp.maximum(z, 0.0) - z * t + jnp.log1p(jnp.exp(-jnp.abs(z))))
    return jnp.sum(loss) / jnp.sum(w)


if __name__ == "__main__":
    key = jax.random.PRNGKey(0)

    def make(shape, k):
        k1, k2, k3 = jax.random.split(k, 3)
        logits = jax.random.normal(k1, shape, dtype=jnp.float32) * 2.0
        labels = (jax.random.uniform(k2, shape) > 0.5).astype(jnp.float32)
        weights = jax.random.uniform(k3, shape, dtype=jnp.float32) + 0.1
        return logits, labels, weights

    cases = [
        ((2, 4, 16, 16), {}),                       # NCHW, n multiple of 1024
        ((3, 5, 17, 13), {}),                       # ragged n -> zero-pad path
        ((2, 4, 64, 65), dict(block_rows=128)),     # multi-block + partial tail block
    ]
    keys = jax.random.split(key, len(cases))
    for (shape, kw), k in zip(cases, keys):
        logits, labels, weights = make(shape, k)
        out = jax.block_until_ready(
            weighted_bce_loss_2d(logits, labels, weights, **kw))
        ref = _reference(logits, labels, weights)
        assert jnp.allclose(out, ref, rtol=1e-5, atol=1e-5), (shape, out, ref)

    print("KERNEL_OK")
</pallas_src>

<mosaic_0001>
module attributes {stable_mosaic.version = 11 : i64} {
  func.func @_wbce_kernel(%arg0: i32, %arg1: i32, %arg2: memref<16x128xf32, #tpu.memory_space<vmem>>, %arg3: memref<16x128xf32, #tpu.memory_space<vmem>>, %arg4: memref<16x128xf32, #tpu.memory_space<vmem>>, %arg5: memref<8x128xf32, #tpu.memory_space<vmem>>, %arg6: memref<8x128xf32, #tpu.memory_space<vmem>>) attributes {dimension_semantics = [#tpu.dimension_semantics<parallel>, #tpu.dimension_semantics<arbitrary>], iteration_bounds = array<i64: 2, 1>, scalar_prefetch = 0 : i64, scratch_operands = 0 : i64, tpu.core_type = #tpu.core_type<tc>, window_params = [{transform_indices = @transform_0, window_bounds = array<i64: 16, 128>}, {transform_indices = @transform_1, window_bounds = array<i64: 16, 128>}, {transform_indices = @transform_2, window_bounds = array<i64: 16, 128>}, {transform_indices = @transform_3, window_bounds = array<i64: 8, 128>}, {transform_indices = @transform_4, window_bounds = array<i64: 8, 128>}]} {
    %c0_i32 = arith.constant 0 : i32
    %0 = arith.cmpi eq, %arg1, %c0_i32 : i32
    %1 = arith.extui %0 : i1 to i32
    %c0_i32_0 = arith.constant 0 : i32
    %2 = arith.cmpi ne, %1, %c0_i32_0 : i32
    scf.if %2 {
      %cst = arith.constant 0.000000e+00 : f32
      %8 = vector.broadcast %cst : f32 to vector<8x128xf32>
      %c0 = arith.constant 0 : index
      %c0_3 = arith.constant 0 : index
      %9 = vector.load %arg5[%c0, %c0_3] : memref<8x128xf32, #tpu.memory_space<vmem>>, vector<8x128xf32>
      tpu.vector_store %arg5[%c0, %c0_3], %8 {strides = array<i32>} : memref<8x128xf32, #tpu.memory_space<vmem>>, vector<8x128xf32>,
      %cst_4 = arith.constant 0.000000e+00 : f32
      %10 = vector.broadcast %cst_4 : f32 to vector<8x128xf32>
      %c0_5 = arith.constant 0 : index
      %c0_6 = arith.constant 0 : index
      %11 = vector.load %arg6[%c0_5, %c0_6] : memref<8x128xf32, #tpu.memory_space<vmem>>, vector<8x128xf32>
      tpu.vector_store %arg6[%c0_5, %c0_6], %10 {strides = array<i32>} : memref<8x128xf32, #tpu.memory_space<vmem>>, vector<8x128xf32>,
    } else {
    }
    %c1_i32 = arith.constant 1 : i32
    %3 = arith.muli %arg0, %c1_i32 : i32
    %4 = arith.addi %3, %arg1 : i32
    %c1_i32_1 = arith.constant 1 : i32
    %5 = arith.cmpi slt, %4, %c1_i32_1 : i32
    %6 = arith.extui %5 : i1 to i32
    %c0_i32_2 = arith.constant 0 : i32
    %7 = arith.cmpi ne, %6, %c0_i32_2 : i32
    scf.if %7 {
      %cst = arith.constant 0.000000e+00 : f32
      %8 = vector.broadcast %cst : f32 to vector<8x128xf32>
      %cst_3 = arith.constant 0.000000e+00 : f32
      %9 = vector.broadcast %cst_3 : f32 to vector<8x128xf32>
      %c0 = arith.constant 0 : index
      %c0_4 = arith.constant 0 : index
      %10 = vector.load %arg2[%c0, %c0_4] : memref<16x128xf32, #tpu.memory_space<vmem>>, vector<16x128xf32>
      %c0_5 = arith.constant 0 : index
      %c0_6 = arith.constant 0 : index
      %11 = vector.load %arg3[%c0_5, %c0_6] : memref<16x128xf32, #tpu.memory_space<vmem>>, vector<16x128xf32>
      %c0_7 = arith.constant 0 : index
      %c0_8 = arith.constant 0 : index
      %12 = vector.load %arg4[%c0_7, %c0_8] : memref<16x128xf32, #tpu.memory_space<vmem>>, vector<16x128xf32>
      %cst_9 = arith.constant 0.000000e+00 : f32
      %13 = vector.broadcast %cst_9 : f32 to vector<16x128xf32>
      %14 = arith.maximumf %10, %13 : vector<16x128xf32>
      %15 = arith.mulf %10, %11 : vector<16x128xf32>
      %16 = arith.subf %14, %15 : vector<16x128xf32>
      %17 = math.absf %10 : vector<16x128xf32>
      %cst_10 = arith.constant 0.000000e+00 : f32
      %18 = vector.broadcast %cst_10 : f32 to vector<16x128xf32>
      %19 = arith.subf %18, %17 : vector<16x128xf32>
      %20 = math.exp %19 : vector<16x128xf32>
      %21 = math.log1p %20 : vector<16x128xf32>
      %22 = arith.addf %16, %21 : vector<16x128xf32>
      %23 = arith.mulf %12, %22 : vector<16x128xf32>
      %24 = vector.shape_cast %23 : vector<16x128xf32> to vector<2x8x128xf32>
      %cst_11 = arith.constant dense<0.000000e+00> : vector<8x128xf32>
      %25 = vector.multi_reduction <add>, %24, %cst_11 [0] : vector<2x8x128xf32> to vector<8x128xf32>
      %26 = arith.addf %8, %25 : vector<8x128xf32>
      %27 = vector.shape_cast %12 : vector<16x128xf32> to vector<2x8x128xf32>
      %cst_12 = arith.constant dense<0.000000e+00> : vector<8x128xf32>
      %28 = vector.multi_reduction <add>, %27, %cst_12 [0] : vector<2x8x128xf32> to vector<8x128xf32>
      %29 = arith.addf %9, %28 : vector<8x128xf32>
      %c0_13 = arith.constant 0 : index
      %c0_14 = arith.constant 0 : index
      %30 = vector.load %arg5[%c0_13, %c0_14] : memref<8x128xf32, #tpu.memory_space<vmem>>, vector<8x128xf32>
      %31 = arith.addf %30, %26 : vector<8x128xf32>
      %c0_15 = arith.constant 0 : index
      %c0_16 = arith.constant 0 : index
      %32 = vector.load %arg5[%c0_15, %c0_16] : memref<8x128xf32, #tpu.memory_space<vmem>>, vector<8x128xf32>
      tpu.vector_store %arg5[%c0_15, %c0_16], %31 {strides = array<i32>} : memref<8x128xf32, #tpu.memory_space<vmem>>, vector<8x128xf32>,
      %c0_17 = arith.constant 0 : index
      %c0_18 = arith.constant 0 : index
      %33 = vector.load %arg6[%c0_17, %c0_18] : memref<8x128xf32, #tpu.memory_space<vmem>>, vector<8x128xf32>
      %34 = arith.addf %33, %29 : vector<8x128xf32>
      %c0_19 = arith.constant 0 : index
      %c0_20 = arith.constant 0 : index
      %35 = vector.load %arg6[%c0_19, %c0_20] : memref<8x128xf32, #tpu.memory_space<vmem>>, vector<8x128xf32>
      tpu.vector_store %arg6[%c0_19, %c0_20], %34 {strides = array<i32>} : memref<8x128xf32, #tpu.memory_space<vmem>>, vector<8x128xf32>,
    } else {
    }
    return
  }
  func.func @transform_0(%arg0: i32, %arg1: i32) -> (i32, i32) {
    %c1_i32 = arith.constant 1 : i32
    %0 = arith.muli %arg0, %c1_i32 : i32
    %1 = arith.addi %0, %arg1 : i32
    %c0_i32 = arith.constant 0 : i32
    %2 = arith.minsi %1, %c0_i32 : i32
    %c0_i32_0 = arith.constant 0 : i32
    %c0_i32_1 = arith.constant 0 : i32
    return %2, %c0_i32_0 : i32, i32
  }
  func.func @transform_1(%arg0: i32, %arg1: i32) -> (i32, i32) {
    %c1_i32 = arith.constant 1 : i32
    %0 = arith.muli %arg0, %c1_i32 : i32
    %1 = arith.addi %0, %arg1 : i32
    %c0_i32 = arith.constant 0 : i32
    %2 = arith.minsi %1, %c0_i32 : i32
    %c0_i32_0 = arith.constant 0 : i32
    %c0_i32_1 = arith.constant 0 : i32
    return %2, %c0_i32_0 : i32, i32
  }
  func.func @transform_2(%arg0: i32, %arg1: i32) -> (i32, i32) {
    %c1_i32 = arith.constant 1 : i32
    %0 = arith.muli %arg0, %c1_i32 : i32
    %1 = arith.addi %0, %arg1 : i32
    %c0_i32 = arith.constant 0 : i32
    %2 = arith.minsi %1, %c0_i32 : i32
    %c0_i32_0 = arith.constant 0 : i32
    %c0_i32_1 = arith.constant 0 : i32
    return %2, %c0_i32_0 : i32, i32
  }
  func.func @transform_3(%arg0: i32, %arg1: i32) -> (i32, i32) {
    %c0_i32 = arith.constant 0 : i32
    %c0_i32_0 = arith.constant 0 : i32
    return %arg0, %c0_i32 : i32, i32
  }
  func.func @transform_4(%arg0: i32, %arg1: i32) -> (i32, i32) {
    %c0_i32 = arith.constant 0 : i32
    %c0_i32_0 = arith.constant 0 : i32
    return %arg0, %c0_i32 : i32, i32
  }
}

</mosaic_0001>

<bundles_post_ra>
// kernel: weighted_bce_loss_2d.1
= control target key start
LH: loop header
LB: loop body
LE: loop exit
PB: predicated region body
PF: predicated region fallthrough
CT: control target
= control target key end

     0   :  { %s606_s15 = smov 0   ;;  %s608_s16 = smov 0   ;;  %s653_s0 = inlined_call_operand.vmem [shape: f32[16,128], index: 0, kind: input, shape index: {}]   ;;  %s654_s1 = inlined_call_operand.vmem [shape: f32[16,128], index: 1, kind: input, shape index: {}]   ;;  %s655_s2 = inlined_call_operand.vmem [shape: f32[16,128], index: 2, kind: input, shape index: {}]   ;;  %s656_s3 = inlined_call_operand.vmem [shape: f32[16,128], index: 3, kind: output, shape index: {0}]   ;;  %s657_s4 = inlined_call_operand.vmem [shape: f32[16,128], index: 4, kind: output, shape index: {1}]  }
   0x1   :  { %s610_s17 = smov 0  }
   0x2 LB: > { %s27_s18 = sadd.s32 1, %s574_s16  ;;  %p511_p0 = scmp.ge.s32.totalorder %s578_s17, 1  ;;  %s578_s17 = sphi %s610_s17, %s15_s17   ;;  %s574_s16 = sphi %s608_s16, %s659_s16   ;;  %s570_s15 = sphi %s606_s15, %s658_s15  }
   0x3   : > { %p29_p1 = scmp.ge.s32.totalorder %s27_s18, 2  ;;  %p236_p2 = scmp.lt.s32.totalorder %s578_s17, 3 }
   0x5   : > { %s661_s18 = smov (%p29_p1, %s27_s18), 0  ;;  %p237_p3 = pnand %p511_p0, %p236_p2 }
   0x6   : > { %p285_p4 = scmp.lt.s32.totalorder (!%p237_p3), %s570_s15, 0  ;;  %p320_p5 = scmp.lt.s32.totalorder (!%p237_p3), %s570_s15, 1 }
   0x7   : > { %240 = sbr.rel (%p237_p3) target bundleno = 72 (0x48), region = 32  ;;  %p520_p7 = scmp.ge.s32.totalorder (!%p237_p3), %s570_s15, 1 }
   0xc   : > { %s286_s19 = scalar_select %p285_p4, %s570_s15, 0  ;;  %v580_v0 = vmov 0.0  }
   0xd   : > { %s321_s20 = scalar_select %p320_p5, %s570_s15, 1 }
   0xe   : > { %s512_s21 = sshll.u32 %s286_s19, 1 }
   0xf   : > { %p288_p6 = scmp.lt.s32.totalorder %s512_s21, 1  ;;  %s518_s22 = sshll.u32 %s321_s20, 3 }
  0x10   : > { %s627_s25 = scalar_lea.vmem %s656_s3, %s518_s22  ;;  %s327_s28 = scalar_lea.vmem %s657_s4, %s518_s22 }
  0x11   : > { %s663_s21 = smov (!%p288_p6, %s512_s21), 1  ;;  %332 = vst [vmem:[%s627_s25] sm:$0xff] %v580_v0  ;;  %333 = vst [vmem:[%s327_s28] sm:$0xff] %v580_v0  ;;  %338 = sbr.rel (%p520_p7) target bundleno = 72 (0x48), region = 40 }
  0x12   : > { %s513_s29 = sshll.u32 %s663_s21, 3 }
  0x13   : > { %s291_s6 = scalar_lea.vmem %s653_s0, %s513_s29  ;;  %s303_s9 = scalar_lea.vmem %s654_s1, %s513_s29 }
  0x14   : > { %s315_s12 = scalar_lea.vmem %s655_s2, %s513_s29 }
  0x16   : > { %v339_v1 = vld [vmem:[%s291_s6] sm:$0xff]  ;;  %v340_v2 = vld [vmem:[%s291_s6 + $0x8] sm:$0xff] }
  0x17   : > { %v343_v3 = vld [vmem:[%s315_s12] sm:$0xff]  ;;  %v344_v4 = vld [vmem:[%s315_s12 + $0x8] sm:$0xff]  ;;  %v351_v5 = vand.u32 2147483647, %v339_v1  ;;  %v352_v6 = vand.u32 2147483647, %v340_v2 }
  0x18   : > { %v383_v7 = vadd.f32 %v344_v4, %v343_v3  ;;  %v388_v8 = vld [vmem:[%s327_s28] sm:$0xff]  ;;  %v342_v21 = vld [vmem:[%s303_s9 + $0x8] sm:$0xff]  ;;  %v345_v23 = vmax.f32 %v339_v1, 0.0  ;;  %v346_v27 = vmax.f32 %v340_v2, 0.0 }
  0x19   : > { %v353_v9 = vsub.f32 0.0, %v351_v5  ;;  %v354_v10 = vsub.f32 0.0, %v352_v6  ;;  %v341_v20 = vld [vmem:[%s303_s9] sm:$0xff]  ;;  %v348_v28 = vmul.f32 %v342_v21, %v340_v2 }
  0x1a   : > { %v389_v11 = vadd.f32 %v388_v8, %v383_v7  ;;  %v347_v24 = vmul.f32 %v341_v20, %v339_v1  ;;  %v385_v44 = vld [vmem:[%s627_s25] sm:$0xff] }
  0x1b   : > { %v355_v12 = vmul.f32 1.442695, %v353_v9  ;;  %v357_v13 = vmul.f32 1.442695, %v354_v10  ;;  %v350_v35 = vsub.f32 %v346_v27, %v348_v28 }
  0x1c   : > { %390 = vst [vmem:[%s327_s28] sm:$0xff] %v389_v11  ;;  %v349_v32 = vsub.f32 %v345_v23, %v347_v24 }
  0x1d   : > { %548 = vpow2.f32 %v355_v12 }
  0x1e   : > { %550 = vpow2.f32 %v357_v13 }
  0x2a   : > { %v549_v14 = vpop.eup %548 }
  0x2b   : > { %v551_v15 = vpop.eup %550  ;;  %v359_v16 = vadd.f32 1.0, %v549_v14  ;;  %v362_v18 = vmul.f32 -0.5, %v549_v14  ;;  %v365_v25 = vand.u32 2147483647, %v549_v14 }
  0x2c   : > { %v368_v17 = vadd.f32 1.0, %v551_v15  ;;  %v371_v19 = vmul.f32 -0.5, %v551_v15  ;;  %v374_v29 = vand.u32 2147483647, %v551_v15 }
  0x2d   : > { %552 = vlog2.f32 %v359_v16  ;;  %v363_v22 = vadd.f32 1.0, %v362_v18  ;;  %vm366_vm0 = vcmp.lt.f32.partialorder %v365_v25, 0.0004427343 }
  0x2e   : > { %554 = vlog2.f32 %v368_v17  ;;  %v372_v26 = vadd.f32 1.0, %v371_v19  ;;  %vm375_vm1 = vcmp.lt.f32.partialorder %v374_v29, 0.0004427343 }
  0x2f   : > { %v364_v30 = vmul.f32 %v549_v14, %v363_v22 }
  0x30   : > { %v373_v33 = vmul.f32 %v551_v15, %v372_v26 }
  0x3a   : > { %v553_v31 = vpop.eup %552 }
  0x3b   : > { %v555_v34 = vpop.eup %554  ;;  %v361_v36 = vmul.f32 0.6931472, %v553_v31 }
  0x3c   : > { %v370_v37 = vmul.f32 0.6931472, %v555_v34 }
  0x3d   : > { %v367_v38 = vsel %vm366_vm0, %v364_v30, %v361_v36 }
  0x3e   : > { %v376_v39 = vsel %vm375_vm1, %v373_v33, %v370_v37  ;;  %v377_v40 = vadd.f32 %v367_v38, %v349_v32 }
  0x3f   : > { %v378_v41 = vadd.f32 %v376_v39, %v350_v35 }
  0x40   : > { %v379_v42 = vmul.f32 %v377_v40, %v343_v3 }
  0x41   : > { %v380_v43 = vmul.f32 %v378_v41, %v344_v4 }
  0x43   : > { %v381_v45 = vadd.f32 %v380_v43, %v379_v42 }
  0x45   : > { %v386_v46 = vadd.f32 %v385_v44, %v381_v45 }
  0x47   : > { %387 = vst [vmem:[%s627_s25] sm:$0xff] %v386_v46 }
  0x48 PF: > { %s15_s17 = sadd.s32 1, %s578_s17   ;;  %s658_s15 = smov %s574_s16 }
  0x49   : > { %p12_p8 = scmp.ge.s32.totalorder %s15_s17, 4   ;;  %s659_s16 = smov %s661_s18 }
  0x4b   :  { %14 = sbr.rel (!%p12_p8) target bundleno = 2 (0x2), region = 88 }

</bundles_post_ra>
